<compile_context>
chip_gen: v5e
topology: v5e:2x2
jax: 0.10.0
libtpu: 0.0.40
codegen_flags: <defaults>
</compile_context>

<pallas_src>
import functools

import jax
import jax.numpy as jnp
from jax import lax
from jax.experimental import pallas as pl
from jax.experimental.pallas import tpu as pltpu

LANES = 128
MAX_ROW_TILE = 1024      # 1024 x 128 f32 = 512 KiB per input per pipeline buffer
NUM_PARTITIONS = 2       # megacore sharding on v7x; near-zero cost on v5e/v6e
_SUBLANES = 8


def _round_up(x, m):
    return (x + m - 1) // m * m


def _ppl_kernel(pred_ref, tgt_ref, sse_out_ref, ssq_out_ref, sse_acc, ssq_acc,
                *, total_rows, row_tile, tiles_per_part):
    c = pl.program_id(0)   # partition (parallel axis)
    i = pl.program_id(1)   # tile within partition (reduction axis)

    @pl.when(i == 0)
    def _():
        sse_acc[...] = jnp.zeros_like(sse_acc)
        ssq_acc[...] = jnp.zeros_like(ssq_acc)

    # Rows at/after `total_rows` (partial last block, or the fully-clamped
    # extra block of the last partition) must contribute zero to both sums.
    row_start = (c * tiles_per_part + i) * row_tile
    rows_left = total_rows - row_start
    row_ids = lax.broadcasted_iota(jnp.int32, (row_tile, LANES), 0)
    mask = row_ids < rows_left

    p = jnp.where(mask, pred_ref[...].astype(jnp.float32), 0.0)
    t = jnp.where(mask, tgt_ref[...].astype(jnp.float32), 0.0)
    d = p - t

    # Sublane-aligned partial fold onto (8, 128) vector accumulators: pure VPU
    # adds per tile, no per-tile cross-lane (XLU) reduction, better f32 accuracy.
    sse_acc[...] += jnp.sum(
        (d * d).reshape(row_tile // _SUBLANES, _SUBLANES, LANES), axis=0)
    ssq_acc[...] += jnp.sum(
        (p * p).reshape(row_tile // _SUBLANES, _SUBLANES, LANES), axis=0)

    @pl.when(i == pl.num_programs(1) - 1)
    def _():
        sse_out_ref[0, :, :] = sse_acc[...]
        ssq_out_ref[0, :, :] = ssq_acc[...]


def privacy_preserving_loss(predictions, targets, *, differential_privacy=True):
    """MSE(pred, tgt) [+ 0.01 * sum(pred^2) when differential_privacy]."""
    assert predictions.shape == targets.shape
    n_total = int(predictions.size)

    p_flat = predictions.reshape(-1)
    t_flat = targets.reshape(-1)
    rem = n_total % LANES
    if rem:
        # Minimal pad only for non-lane-aligned sizes; identical zero padding of
        # pred and tgt adds 0 to both the squared-error and pred^2 sums.
        pad = LANES - rem
        p_flat = jnp.pad(p_flat, (0, pad))
        t_flat = jnp.pad(t_flat, (0, pad))
    rows = p_flat.size // LANES
    p2d = p_flat.reshape(rows, LANES)
    t2d = t_flat.reshape(rows, LANES)

    # Keep the original dtype through the BlockSpec (cast to f32 in-kernel);
    # pick the native sublane granularity for that dtype.
    itemsize = jnp.dtype(predictions.dtype).itemsize
    sub = {4: 8, 2: 16, 1: 32}.get(itemsize, 8)
    row_tile = min(MAX_ROW_TILE, _round_up(rows, max(sub, _SUBLANES)))

    tiles_total = pl.cdiv(rows, row_tile)
    num_partitions = min(NUM_PARTITIONS, tiles_total)
    tiles_per_part = pl.cdiv(tiles_total, num_partitions)
    max_block = tiles_total - 1

    def in_map(c, i):
        # Clamp so the (possibly) extra block of the last partition stays in
        # bounds; its contribution is masked to zero inside the kernel.
        return (jnp.minimum(c * tiles_per_part + i, max_block), 0)

    kernel = functools.partial(
        _ppl_kernel, total_rows=rows, row_tile=row_tile,
        tiles_per_part=tiles_per_part)

    sse_parts, ssq_parts = pl.pallas_call(
        kernel,
        out_shape=(
            jax.ShapeDtypeStruct((num_partitions, _SUBLANES, LANES), jnp.float32),
            jax.ShapeDtypeStruct((num_partitions, _SUBLANES, LANES), jnp.float32),
        ),
        grid_spec=pltpu.PrefetchScalarGridSpec(
            num_scalar_prefetch=0,
            grid=(num_partitions, tiles_per_part),
            in_specs=[
                pl.BlockSpec((row_tile, LANES), in_map),
                pl.BlockSpec((row_tile, LANES), in_map),
            ],
            out_specs=[
                pl.BlockSpec((1, _SUBLANES, LANES), lambda c, i: (c, 0, 0)),
                pl.BlockSpec((1, _SUBLANES, LANES), lambda c, i: (c, 0, 0)),
            ],
            scratch_shapes=[
                pltpu.VMEM((_SUBLANES, LANES), jnp.float32),  # sum((p-t)^2) acc
                pltpu.VMEM((_SUBLANES, LANES), jnp.float32),  # sum(p^2) acc
            ],
        ),
        compiler_params=pltpu.CompilerParams(
            dimension_semantics=("parallel", "arbitrary"),
        ),
    )(p2d, t2d)

    # Final cross-lane reduction on the tiny (P, 8, 128) partials (plain XLA).
    mse = jnp.sum(sse_parts) / jnp.float32(n_total)
    if differential_privacy:
        return mse + jnp.float32(0.01) * jnp.sum(ssq_parts)
    return mse


def privacy_preserving_loss_ref(predictions, targets, *, differential_privacy=True):
    p = predictions.astype(jnp.float32)
    t = targets.astype(jnp.float32)
    loss = jnp.mean((p - t) ** 2)
    if differential_privacy:
        loss = loss + 0.01 * jnp.sum(p ** 2)
    return loss


if __name__ == "__main__":
    key = jax.random.PRNGKey(0)
    k1, k2, k3, k4, k5, k6 = jax.random.split(key, 6)

    # NCHW-like predictions/targets (batch=2, channels=4, 16x16) — lane-aligned.
    preds = jax.random.normal(k1, (2, 4, 16, 16), dtype=jnp.float32)
    tgts = jax.random.normal(k2, (2, 4, 16, 16), dtype=jnp.float32)
    out = jax.block_until_ready(privacy_preserving_loss(preds, tgts))
    ref = privacy_preserving_loss_ref(preds, tgts)
    assert jnp.allclose(out, ref, rtol=1e-5, atol=1e-5), (out, ref)

    # differential_privacy=False path returns the plain MSE (previously broken).
    out_nodp = jax.block_until_ready(
        privacy_preserving_loss(preds, tgts, differential_privacy=False))
    ref_nodp = privacy_preserving_loss_ref(preds, tgts, differential_privacy=False)
    assert jnp.allclose(out_nodp, ref_nodp, rtol=1e-5, atol=1e-5), (out_nodp, ref_nodp)

    # Ragged (non-128-multiple) shape exercises the minimal pad + masked tile.
    preds_r = jax.random.normal(k3, (3, 5, 9, 13), dtype=jnp.float32)
    tgts_r = jax.random.normal(k4, (3, 5, 9, 13), dtype=jnp.float32)
    out_r = jax.block_until_ready(privacy_preserving_loss(preds_r, tgts_r))
    ref_r = privacy_preserving_loss_ref(preds_r, tgts_r)
    assert jnp.allclose(out_r, ref_r, rtol=1e-5, atol=1e-5), (out_r, ref_r)

    # Larger input exercises multi-tile accumulation, the 2-way partition axis,
    # and the clamped + masked extra block (2500 rows -> 3 tiles, 2 partitions).
    preds_b = jax.random.normal(k5, (50, 100, 64), dtype=jnp.float32)
    tgts_b = jax.random.normal(k6, (50, 100, 64), dtype=jnp.float32)
    out_b = jax.block_until_ready(privacy_preserving_loss(preds_b, tgts_b))
    ref_b = privacy_preserving_loss_ref(preds_b, tgts_b)
    assert jnp.allclose(out_b, ref_b, rtol=1e-4, atol=1e-3), (out_b, ref_b)

    print("KERNEL_OK")
</pallas_src>

<mosaic_0001>
module attributes {stable_mosaic.version = 11 : i64} {
  func.func @_ppl_kernel(%arg0: i32, %arg1: i32, %arg2: memref<16x128xf32, #tpu.memory_space<vmem>>, %arg3: memref<16x128xf32, #tpu.memory_space<vmem>>, %arg4: memref<1x8x128xf32, #tpu.memory_space<vmem>>, %arg5: memref<1x8x128xf32, #tpu.memory_space<vmem>>, %arg6: memref<8x128xf32, #tpu.memory_space<vmem>>, %arg7: memref<8x128xf32, #tpu.memory_space<vmem>>) attributes {dimension_semantics = [#tpu.dimension_semantics<parallel>, #tpu.dimension_semantics<arbitrary>], iteration_bounds = array<i64: 1, 1>, scalar_prefetch = 0 : i64, scratch_operands = 2 : i64, tpu.core_type = #tpu.core_type<tc>, window_params = [{transform_indices = @transform_0, window_bounds = array<i64: 16, 128>}, {transform_indices = @transform_1, window_bounds = array<i64: 16, 128>}, {transform_indices = @transform_2, window_bounds = array<i64: 1, 8, 128>}, {transform_indices = @transform_3, window_bounds = array<i64: 1, 8, 128>}]} {
    %c0_i32 = arith.constant 0 : i32
    %0 = arith.cmpi eq, %arg1, %c0_i32 : i32
    %1 = arith.extui %0 : i1 to i32
    %c0_i32_0 = arith.constant 0 : i32
    %2 = arith.cmpi ne, %1, %c0_i32_0 : i32
    scf.if %2 {
      %cst_18 = arith.constant 0.000000e+00 : f32
      %32 = vector.broadcast %cst_18 : f32 to vector<8x128xf32>
      %c0_19 = arith.constant 0 : index
      %c0_20 = arith.constant 0 : index
      %33 = vector.load %arg6[%c0_19, %c0_20] : memref<8x128xf32, #tpu.memory_space<vmem>>, vector<8x128xf32>
      tpu.vector_store %arg6[%c0_19, %c0_20], %32 {strides = array<i32>} : memref<8x128xf32, #tpu.memory_space<vmem>>, vector<8x128xf32>,
      %cst_21 = arith.constant 0.000000e+00 : f32
      %34 = vector.broadcast %cst_21 : f32 to vector<8x128xf32>
      %c0_22 = arith.constant 0 : index
      %c0_23 = arith.constant 0 : index
      %35 = vector.load %arg7[%c0_22, %c0_23] : memref<8x128xf32, #tpu.memory_space<vmem>>, vector<8x128xf32>
      tpu.vector_store %arg7[%c0_22, %c0_23], %34 {strides = array<i32>} : memref<8x128xf32, #tpu.memory_space<vmem>>, vector<8x128xf32>,
    } else {
    }
    %c1_i32 = arith.constant 1 : i32
    %3 = arith.muli %arg0, %c1_i32 : i32
    %4 = arith.addi %3, %arg1 : i32
    %c16_i32 = arith.constant 16 : i32
    %5 = arith.muli %4, %c16_i32 : i32
    %c16_i32_1 = arith.constant 16 : i32
    %6 = arith.subi %c16_i32_1, %5 : i32
    %7 = tpu.iota {dimensions = array<i32: 0>} : vector<16x128xi32>
    %8 = vector.broadcast %6 : i32 to vector<16x128xi32>
    %9 = arith.cmpi slt, %7, %8 : vector<16x128xi32>
    %c0 = arith.constant 0 : index
    %c0_2 = arith.constant 0 : index
    %10 = vector.load %arg2[%c0, %c0_2] : memref<16x128xf32, #tpu.memory_space<vmem>>, vector<16x128xf32>
    %cst = arith.constant 0.000000e+00 : f32
    %11 = vector.broadcast %cst : f32 to vector<16x128xf32>
    %12 = arith.select %9, %10, %11 : vector<16x128xi1>, vector<16x128xf32>
    %c0_3 = arith.constant 0 : index
    %c0_4 = arith.constant 0 : index
    %13 = vector.load %arg3[%c0_3, %c0_4] : memref<16x128xf32, #tpu.memory_space<vmem>>, vector<16x128xf32>
    %cst_5 = arith.constant 0.000000e+00 : f32
    %14 = vector.broadcast %cst_5 : f32 to vector<16x128xf32>
    %15 = arith.select %9, %13, %14 : vector<16x128xi1>, vector<16x128xf32>
    %16 = arith.subf %12, %15 : vector<16x128xf32>
    %c0_6 = arith.constant 0 : index
    %c0_7 = arith.constant 0 : index
    %17 = vector.load %arg6[%c0_6, %c0_7] : memref<8x128xf32, #tpu.memory_space<vmem>>, vector<8x128xf32>
    %18 = arith.mulf %16, %16 : vector<16x128xf32>
    %19 = vector.shape_cast %18 : vector<16x128xf32> to vector<2x8x128xf32>
    %cst_8 = arith.constant dense<0.000000e+00> : vector<8x128xf32>
    %20 = vector.multi_reduction <add>, %19, %cst_8 [0] : vector<2x8x128xf32> to vector<8x128xf32>
    %21 = arith.addf %17, %20 : vector<8x128xf32>
    %c0_9 = arith.constant 0 : index
    %c0_10 = arith.constant 0 : index
    %22 = vector.load %arg6[%c0_9, %c0_10] : memref<8x128xf32, #tpu.memory_space<vmem>>, vector<8x128xf32>
    tpu.vector_store %arg6[%c0_9, %c0_10], %21 {strides = array<i32>} : memref<8x128xf32, #tpu.memory_space<vmem>>, vector<8x128xf32>,
    %c0_11 = arith.constant 0 : index
    %c0_12 = arith.constant 0 : index
    %23 = vector.load %arg7[%c0_11, %c0_12] : memref<8x128xf32, #tpu.memory_space<vmem>>, vector<8x128xf32>
    %24 = arith.mulf %12, %12 : vector<16x128xf32>
    %25 = vector.shape_cast %24 : vector<16x128xf32> to vector<2x8x128xf32>
    %cst_13 = arith.constant dense<0.000000e+00> : vector<8x128xf32>
    %26 = vector.multi_reduction <add>, %25, %cst_13 [0] : vector<2x8x128xf32> to vector<8x128xf32>
    %27 = arith.addf %23, %26 : vector<8x128xf32>
    %c0_14 = arith.constant 0 : index
    %c0_15 = arith.constant 0 : index
    %28 = vector.load %arg7[%c0_14, %c0_15] : memref<8x128xf32, #tpu.memory_space<vmem>>, vector<8x128xf32>
    tpu.vector_store %arg7[%c0_14, %c0_15], %27 {strides = array<i32>} : memref<8x128xf32, #tpu.memory_space<vmem>>, vector<8x128xf32>,
    %c0_i32_16 = arith.constant 0 : i32
    %29 = arith.cmpi eq, %arg1, %c0_i32_16 : i32
    %30 = arith.extui %29 : i1 to i32
    %c0_i32_17 = arith.constant 0 : i32
    %31 = arith.cmpi ne, %30, %c0_i32_17 : i32
    scf.if %31 {
      %c0_18 = arith.constant 0 : index
      %c0_19 = arith.constant 0 : index
      %32 = vector.load %arg6[%c0_18, %c0_19] : memref<8x128xf32, #tpu.memory_space<vmem>>, vector<8x128xf32>
      %c0_20 = arith.constant 0 : index
      %c0_21 = arith.constant 0 : index
      %c0_22 = arith.constant 0 : index
      %33 = vector.load %arg4[%c0_20, %c0_21, %c0_22] : memref<1x8x128xf32, #tpu.memory_space<vmem>>, vector<1x8x128xf32>
      %34 = vector.shape_cast %33 : vector<1x8x128xf32> to vector<8x128xf32>
      %35 = vector.shape_cast %32 : vector<8x128xf32> to vector<1x8x128xf32>
      tpu.vector_store %arg4[%c0_20, %c0_21, %c0_22], %35 {strides = array<i32>} : memref<1x8x128xf32, #tpu.memory_space<vmem>>, vector<1x8x128xf32>,
      %c0_23 = arith.constant 0 : index
      %c0_24 = arith.constant 0 : index
      %36 = vector.load %arg7[%c0_23, %c0_24] : memref<8x128xf32, #tpu.memory_space<vmem>>, vector<8x128xf32>
      %c0_25 = arith.constant 0 : index
      %c0_26 = arith.constant 0 : index
      %c0_27 = arith.constant 0 : index
      %37 = vector.load %arg5[%c0_25, %c0_26, %c0_27] : memref<1x8x128xf32, #tpu.memory_space<vmem>>, vector<1x8x128xf32>
      %38 = vector.shape_cast %37 : vector<1x8x128xf32> to vector<8x128xf32>
      %39 = vector.shape_cast %36 : vector<8x128xf32> to vector<1x8x128xf32>
      tpu.vector_store %arg5[%c0_25, %c0_26, %c0_27], %39 {strides = array<i32>} : memref<1x8x128xf32, #tpu.memory_space<vmem>>, vector<1x8x128xf32>,
    } else {
    }
    return
  }
  func.func @transform_0(%arg0: i32, %arg1: i32) -> (i32, i32) {
    %c1_i32 = arith.constant 1 : i32
    %0 = arith.muli %arg0, %c1_i32 : i32
    %1 = arith.addi %0, %arg1 : i32
    %c0_i32 = arith.constant 0 : i32
    %2 = arith.minsi %1, %c0_i32 : i32
    %c0_i32_0 = arith.constant 0 : i32
    %c0_i32_1 = arith.constant 0 : i32
    return %2, %c0_i32_0 : i32, i32
  }
  func.func @transform_1(%arg0: i32, %arg1: i32) -> (i32, i32) {
    %c1_i32 = arith.constant 1 : i32
    %0 = arith.muli %arg0, %c1_i32 : i32
    %1 = arith.addi %0, %arg1 : i32
    %c0_i32 = arith.constant 0 : i32
    %2 = arith.minsi %1, %c0_i32 : i32
    %c0_i32_0 = arith.constant 0 : i32
    %c0_i32_1 = arith.constant 0 : i32
    return %2, %c0_i32_0 : i32, i32
  }
  func.func @transform_2(%arg0: i32, %arg1: i32) -> (i32, i32, i32) {
    %c0_i32 = arith.constant 0 : i32
    %c0_i32_0 = arith.constant 0 : i32
    %c0_i32_1 = arith.constant 0 : i32
    return %arg0, %c0_i32, %c0_i32_0 : i32, i32, i32
  }
  func.func @transform_3(%arg0: i32, %arg1: i32) -> (i32, i32, i32) {
    %c0_i32 = arith.constant 0 : i32
    %c0_i32_0 = arith.constant 0 : i32
    %c0_i32_1 = arith.constant 0 : i32
    return %arg0, %c0_i32, %c0_i32_0 : i32, i32, i32
  }
}

</mosaic_0001>

<bundles_post_ra>
// kernel: tpu_custom_call.1
= control target key start
LH: loop header
LB: loop body
LE: loop exit
PB: predicated region body
PF: predicated region fallthrough
CT: control target
= control target key end

     0   :  { %9 = vsyncpa [#allocation5], 0  ;;  %s297_s0 = inlined_call_operand.hbm [shape: f32[16,128], index: 0, kind: input, shape index: {}]   ;;  %s298_s1 = inlined_call_operand.hbm [shape: f32[16,128], index: 1, kind: input, shape index: {}]   ;;  %s299_s2 = inlined_call_operand.hbm [shape: f32[1,8,128], index: 2, kind: output, shape index: {0}]   ;;  %s300_s3 = inlined_call_operand.hbm [shape: f32[1,8,128], index: 3, kind: output, shape index: {1}]  }
   0x1   :  { %10 = vsyncpa [#allocation8], 0 }
   0x2   :  { %11 = vsyncpa [#allocation6], 0 }
   0x3   :  { %12 = vsyncpa [#allocation11], 0  ;;  %s23_s14 = sshll.u32 %s297_s0, 4  ;;  %s259_s15 = smov [#allocation4]   ;;  %s24_s14 = int_to_ptr.hbm [resolvable:$true] %s23_s14 }
   0x4   :  { %s25_s16 = sshll.u32 %s259_s15, 4  ;;  %s42_s19 = sshll.u32 %s298_s1, 4  ;;  %s26_s16 = int_to_ptr.vmem [resolvable:$true] %s25_s16  ;;  %s43_s19 = int_to_ptr.hbm [resolvable:$true] %s42_s19 }
   0x5   :  { %s260_s20 = smov 128   ;;  %s261_s21 = smov 8  }
   0x6   :  { %31 = dma.hbm_to_vmem [thread:$0]  %s24_s14, 256, %s26_s16, [#allocation5], %s260_s20, %s260_s20, %s261_s21  }
   0x7   :  { %s262_s22 = smov [#allocation7]  }
   0x8   :  { %s44_s23 = sshll.u32 %s262_s22, 4  ;;  %s45_s23 = int_to_ptr.vmem [resolvable:$true] %s44_s23 }
   0x9   :  { %50 = dma.hbm_to_vmem [thread:$0]  %s43_s19, 256, %s45_s23, [#allocation8], %s260_s20, %s260_s20, %s261_s21  }
   0xa   :  { %251 = dma.done.wait [#allocation5], 256  }
   0xb   :  { %252 = vsyncadd [#allocation5], 4294967040 }
   0xc   :  { %253 = dma.done.wait [#allocation8], 256  }
   0xd   :  { %254 = vsyncadd [#allocation8], 4294967040  ;;  %v82_v0 = vld [vmem:[#allocation4] sm:$0xff]  ;;  %v83_v1 = vld [vmem:[#allocation4 + $0x8] sm:$0xff]  ;;  %s263_s0 = smov [#allocation10]   ;;  %s129_s1 = sshll.u32 %s300_s3, 4  ;;  %s130_s1 = int_to_ptr.hbm [resolvable:$true] %s129_s1 }
   0xe   :  { %v86_v2 = vld [vmem:[#allocation7] sm:$0xff]  ;;  %s127_s24 = sshll.u32 %s263_s0, 4  ;;  %v87_v3 = vld [vmem:[#allocation7 + $0x8] sm:$0xff]  ;;  %v99_v5 = vmul.f32 %v82_v0, %v82_v0  ;;  %v100_v6 = vmul.f32 %v83_v1, %v83_v1  ;;  %s264_s27 = smov [#allocation9]   ;;  %s128_s24 = int_to_ptr.vmem [resolvable:$true] %s127_s24 }
   0xf   :  { %v90_v4 = vsub.f32 %v82_v0, %v86_v2  ;;  %v91_v7 = vsub.f32 %v83_v1, %v87_v3  ;;  %s116_s28 = sshll.u32 %s264_s27, 4  ;;  %s118_s4 = sshll.u32 %s299_s2, 4  ;;  %s117_s28 = int_to_ptr.vmem [resolvable:$true] %s116_s28  ;;  %s119_s4 = int_to_ptr.hbm [resolvable:$true] %s118_s4 }
  0x10   :  { %v101_v9 = vadd.f32 %v100_v6, %v99_v5 }
  0x11   :  { %v93_v8 = vmul.f32 %v90_v4, %v90_v4  ;;  %v94_v10 = vmul.f32 %v91_v7, %v91_v7 }
  0x12   :  { %110 = vst [vmem:[#allocation10] sm:$0xff] %v101_v9 }
  0x13   :  { %v95_v11 = vadd.f32 %v94_v10, %v93_v8  ;;  %132 = dma.vmem_to_hbm [thread:$0]  %s128_s24, 128, %s130_s1, [#allocation11]  }
  0x15   :  { %108 = vst [vmem:[#allocation9] sm:$0xff] %v95_v11 }
  0x16   :  { %121 = dma.vmem_to_hbm [thread:$0]  %s117_s28, 128, %s119_s4, [#allocation6]  }
  0x17   :  { %255 = dma.done.wait [#allocation6], 128  }
  0x18   :  { %256 = vsyncadd [#allocation6], 4294967168 }
  0x19   :  { %257 = dma.done.wait [#allocation11], 128  }
  0x1a   :  { %258 = vsyncadd [#allocation11], 4294967168 }
  0x1b   :  { %141 = vsyncpa [#allocation5], 1 }
  0x1c   :  { %142 = vsyncpa [#allocation8], 1 }
  0x1d   :  { %143 = vsyncpa [#allocation6], 1 }
  0x1e   :  { %144 = vsyncpa [#allocation11], 1 }

</bundles_post_ra>
